<compile_context>
chip_gen: v7x
topology: tpu7x:2x2x1
jax: 0.10.0
libtpu: 0.0.40
codegen_flags: <defaults>
</compile_context>

<pallas_src>
import jax
import jax.numpy as jnp
from jax.experimental import pallas as pl
from jax.experimental.pallas import tpu as pltpu


# Layer widths of the PyTorch `Network`: 84 -> 60 -> 40 -> 20 -> 8.
_IN = 84
_DIMS = [(84, 60), (60, 40), (40, 20), (20, 8)]
_PAD = 128                 # every hidden width fits in one 128-lane vreg
_ONES_LANE = _PAD - 1      # spare lane carrying a constant 1.0 (bias folding)
_OUT = 8
_SLOPE = 0.01


def _round_up(n, m):
    return (n + m - 1) // m * m


def mlp_kernel(x_ref, w1_ref, wp_ref, b1_ref, o_ref):
    """Fused 4-layer MLP on one (TB, 84) batch tile.

    Hidden activations live at a padded 128-lane width.  The weight slabs are
    zero-padded, so padded lanes stay exactly 0 through every layer, and lane
    _ONES_LANE stays exactly 1 (LeakyReLU(1)==1), which lets layers 2-4 pick
    up their bias from row _ONES_LANE of their weight slab (no VPU adds).
    """
    cdt = w1_ref.dtype   # compute dtype (bf16 by default, f32 optional)

    def act(h):
        # LeakyReLU as max(h, slope*h): 2 VALU ops, runs in `cdt` (packed
        # bf16 on v6e/v7x), exact for 0 and 1 so padding/ones-lane survive.
        return jnp.maximum(h, _SLOPE * h)

    # Layer 1 (84 -> 60): single VPU bias add; the bias row also plants the
    # constant 1.0 into lane _ONES_LANE.
    h = jnp.dot(x_ref[...], w1_ref[...], preferred_element_type=cdt) + b1_ref[...]
    h = act(h)
    # Layers 2 and 3: bias folded into the matmul via the ones lane.
    h = act(jnp.dot(h, wp_ref[0], preferred_element_type=cdt))
    h = act(jnp.dot(h, wp_ref[1], preferred_element_type=cdt))
    # Output layer (20 -> 8): f32 accumulation, bias folded as well.
    out = jnp.dot(h, wp_ref[2], preferred_element_type=jnp.float32)
    o_ref[...] = out[:, :_OUT].astype(o_ref.dtype)


def pack_params(params, compute_dtype=jnp.bfloat16):
    """Pack the 8 parameter arrays into 3 DMA-friendly, lane-aligned slabs.

    w1p : (84, 128)      layer-1 weight (in, out), zero padded on out dim
    wp  : (3, 128, 128)  layers 2-4 weights; row _ONES_LANE carries the bias,
                         and (for layers 2,3) a 1.0 at [_ONES_LANE,_ONES_LANE]
                         to propagate the constant-1 lane.
    b1p : (1, 128)       layer-1 bias, with 1.0 planted at lane _ONES_LANE.
    """
    w1p = jnp.zeros((_IN, _PAD), compute_dtype)
    w1p = w1p.at[:, :_DIMS[0][1]].set(params["w1"].astype(compute_dtype))

    b1p = jnp.zeros((1, _PAD), compute_dtype)
    b1p = b1p.at[0, :_DIMS[0][1]].set(params["b1"].astype(compute_dtype))
    b1p = b1p.at[0, _ONES_LANE].set(jnp.asarray(1.0, compute_dtype))

    wp = jnp.zeros((3, _PAD, _PAD), compute_dtype)
    for i, (wname, bname) in enumerate((("w2", "b2"), ("w3", "b3"), ("w4", "b4"))):
        fi, fo = _DIMS[i + 1]
        wp = wp.at[i, :fi, :fo].set(params[wname].astype(compute_dtype))
        wp = wp.at[i, _ONES_LANE, :fo].set(params[bname].astype(compute_dtype))
        if i < 2:   # keep the ones lane alive for the next layer
            wp = wp.at[i, _ONES_LANE, _ONES_LANE].set(jnp.asarray(1.0, compute_dtype))
    return w1p, wp, b1p


def _vmem_limit_bytes():
    """Raise the scoped-VMEM limit safely per chip (fallback: 32 MiB)."""
    try:
        cap = int(pltpu.get_tpu_info().vmem_capacity_bytes)
        return int(min(cap // 2, 64 * 1024 * 1024))
    except Exception:
        return 32 * 1024 * 1024


def network_forward(x, packed_params, *, block_b=4096):
    """x: (B, 84). packed_params: output of pack_params(). Returns (B, 8) f32."""
    w1p, wp, b1p = packed_params
    B, F = x.shape
    assert F == _IN, f"expected {_IN} input features, got {F}"

    compute_dtype = w1p.dtype
    # Sublane packing: f32 tiles want multiples of 8 rows, bf16 multiples of 16.
    row_mult = 16 if compute_dtype == jnp.bfloat16 else 8

    # Batch tile: as large as block_b (amortizes ~0.35us/step overhead), but
    # capped by B; when more than one tile is needed, keep the grid length
    # even so v7x's two TensorCores split the batch evenly.
    tb = min(_round_up(block_b, row_mult), _round_up(B, row_mult))
    num_tiles = int(pl.cdiv(B, tb))
    if num_tiles > 1 and num_tiles % 2:
        num_tiles += 1
    tb = _round_up(-(-B // num_tiles), row_mult)
    b_padded = tb * num_tiles

    if b_padded != B:
        x = jnp.pad(x, ((0, b_padded - B), (0, 0)))
    x = x.astype(compute_dtype)

    out = pl.pallas_call(
        mlp_kernel,
        out_shape=jax.ShapeDtypeStruct((b_padded, _OUT), jnp.float32),
        grid=(num_tiles,),
        in_specs=[
            # Batch-tiled input: pipelined / double-buffered across the grid.
            pl.BlockSpec((tb, _IN), lambda i: (i, 0)),
            # Parameters: constant index maps -> fetched once, VMEM-resident.
            pl.BlockSpec((_IN, _PAD), lambda i: (0, 0)),
            pl.BlockSpec((3, _PAD, _PAD), lambda i: (0, 0, 0)),
            pl.BlockSpec((1, _PAD), lambda i: (0, 0)),
        ],
        out_specs=pl.BlockSpec((tb, _OUT), lambda i: (i, 0)),
        compiler_params=pltpu.CompilerParams(
            # Independent batch tiles: shard across both TensorCores on v7x.
            dimension_semantics=("parallel",),
            vmem_limit_bytes=_vmem_limit_bytes(),
        ),
    )(x, w1p, wp, b1p)

    return out[:B]


def init_params(key):
    """Deterministic init matching the PyTorch module's layer shapes.

    PyTorch Linear stores weight as (out, in); we store the transpose (in, out)
    so the kernel computes x @ W directly. Init mimics torch's fan-in uniform.
    """
    params = {}
    for idx, (fan_in, fan_out) in enumerate(_DIMS, start=1):
        key, kw, kb = jax.random.split(key, 3)
        bound = 1.0 / jnp.sqrt(jnp.float32(fan_in))
        params[f"w{idx}"] = jax.random.uniform(
            kw, (fan_in, fan_out), jnp.float32, minval=-bound, maxval=bound)
        params[f"b{idx}"] = jax.random.uniform(
            kb, (fan_out,), jnp.float32, minval=-bound, maxval=bound)
    return params


def reference_forward(x, params):
    """Pure-JAX f32 reference for correctness checking."""
    h = x @ params["w1"] + params["b1"]
    h = jnp.where(h > 0, h, _SLOPE * h)
    h = h @ params["w2"] + params["b2"]
    h = jnp.where(h > 0, h, _SLOPE * h)
    h = h @ params["w3"] + params["b3"]
    h = jnp.where(h > 0, h, _SLOPE * h)
    return h @ params["w4"] + params["b4"]


if __name__ == "__main__":
    key = jax.random.PRNGKey(0)
    key, kx_small, kx_mid = jax.random.split(key, 3)
    params = init_params(key)

    x_small = jax.random.normal(kx_small, (10, _IN), jnp.float32)
    x_mid = jax.random.normal(kx_mid, (200, _IN), jnp.float32)
    ref_small = reference_forward(x_small, params)
    ref_mid = reference_forward(x_mid, params)

    # --- f32 path, small batch (exercises padding; tight correctness) ---
    packed_f32 = pack_params(params, jnp.float32)
    out_small = jax.block_until_ready(network_forward(x_small, packed_f32))
    assert out_small.shape == (10, _OUT), out_small.shape
    assert jnp.allclose(out_small, ref_small, atol=2e-5, rtol=2e-5), \
        "f32 small-batch mismatch vs reference"

    # --- f32 path, multi-tile grid (block_b=64 -> 4 batch tiles) ---
    out_mid_f32 = jax.block_until_ready(
        network_forward(x_mid, packed_f32, block_b=64))
    assert out_mid_f32.shape == (200, _OUT), out_mid_f32.shape
    assert jnp.allclose(out_mid_f32, ref_mid, atol=2e-5, rtol=2e-5), \
        "f32 multi-tile mismatch vs reference"

    # --- default bf16 path (full MXU rate, halved x HBM traffic) ---
    packed_bf16 = pack_params(params)           # bf16 is the default now
    out_mid_bf16 = jax.block_until_ready(
        network_forward(x_mid, packed_bf16, block_b=64))
    assert out_mid_bf16.shape == (200, _OUT), out_mid_bf16.shape
    assert jnp.allclose(out_mid_bf16, ref_mid, atol=2e-1, rtol=5e-2), \
        "bf16 mismatch vs reference"

    print("KERNEL_OK")
</pallas_src>

<mosaic_0001>
module attributes {stable_mosaic.version = 11 : i64} {
  func.func @mlp_kernel(%arg0: i32, %arg1: memref<16x84xf32, #tpu.memory_space<vmem>>, %arg2: memref<84x128xf32, #tpu.memory_space<vmem>>, %arg3: memref<3x128x128xf32, #tpu.memory_space<vmem>>, %arg4: memref<1x128xf32, #tpu.memory_space<vmem>>, %arg5: memref<16x8xf32, #tpu.memory_space<vmem>>) attributes {dimension_semantics = [#tpu.dimension_semantics<parallel>], iteration_bounds = array<i64: 1>, scalar_prefetch = 0 : i64, scratch_operands = 0 : i64, tpu.core_type = #tpu.core_type<tc>, window_params = [{transform_indices = @transform_0, window_bounds = array<i64: 16, 84>}, {pipeline_mode = #tpu.pipeline_mode<synchronous>, transform_indices = @transform_1, window_bounds = array<i64: 84, 128>}, {pipeline_mode = #tpu.pipeline_mode<synchronous>, transform_indices = @transform_2, window_bounds = array<i64: 3, 128, 128>}, {pipeline_mode = #tpu.pipeline_mode<synchronous>, transform_indices = @transform_3, window_bounds = array<i64: 1, 128>}, {transform_indices = @transform_4, window_bounds = array<i64: 16, 8>}]} {
    %c0 = arith.constant 0 : index
    %c0_0 = arith.constant 0 : index
    %0 = vector.load %arg1[%c0, %c0_0] : memref<16x84xf32, #tpu.memory_space<vmem>>, vector<16x84xf32>
    %c0_1 = arith.constant 0 : index
    %c0_2 = arith.constant 0 : index
    %1 = vector.load %arg2[%c0_1, %c0_2] : memref<84x128xf32, #tpu.memory_space<vmem>>, vector<84x128xf32>
    %cst = arith.constant dense<0.000000e+00> : vector<16x128xf32>
    %2 = tpu.matmul %0, %1, %cst {dimension_numbers = #tpu.dot_dimension_numbers<[1], [0], [0], [1], [0, 0, 1, 1], [], []>} : vector<16x84xf32>, vector<84x128xf32>, vector<16x128xf32> -> vector<16x128xf32>
    %c0_3 = arith.constant 0 : index
    %c0_4 = arith.constant 0 : index
    %3 = vector.load %arg4[%c0_3, %c0_4] : memref<1x128xf32, #tpu.memory_space<vmem>>, vector<1x128xf32>
    %4 = vector.broadcast %3 : vector<1x128xf32> to vector<16x128xf32>
    %5 = arith.addf %2, %4 : vector<16x128xf32>
    %cst_5 = arith.constant 0.00999999977 : f32
    %6 = vector.broadcast %cst_5 : f32 to vector<16x128xf32>
    %7 = arith.mulf %6, %5 : vector<16x128xf32>
    %8 = arith.maximumf %5, %7 : vector<16x128xf32>
    %c0_6 = arith.constant 0 : index
    %c0_7 = arith.constant 0 : index
    %c0_8 = arith.constant 0 : index
    %9 = vector.load %arg3[%c0_6, %c0_7, %c0_8] : memref<3x128x128xf32, #tpu.memory_space<vmem>>, vector<1x128x128xf32>
    %10 = vector.shape_cast %9 : vector<1x128x128xf32> to vector<128x128xf32>
    %cst_9 = arith.constant dense<0.000000e+00> : vector<16x128xf32>
    %11 = tpu.matmul %8, %10, %cst_9 {dimension_numbers = #tpu.dot_dimension_numbers<[1], [0], [0], [1], [0, 0, 1, 1], [], []>} : vector<16x128xf32>, vector<128x128xf32>, vector<16x128xf32> -> vector<16x128xf32>
    %cst_10 = arith.constant 0.00999999977 : f32
    %12 = vector.broadcast %cst_10 : f32 to vector<16x128xf32>
    %13 = arith.mulf %12, %11 : vector<16x128xf32>
    %14 = arith.maximumf %11, %13 : vector<16x128xf32>
    %c1 = arith.constant 1 : index
    %c0_11 = arith.constant 0 : index
    %c0_12 = arith.constant 0 : index
    %15 = vector.load %arg3[%c1, %c0_11, %c0_12] : memref<3x128x128xf32, #tpu.memory_space<vmem>>, vector<1x128x128xf32>
    %16 = vector.shape_cast %15 : vector<1x128x128xf32> to vector<128x128xf32>
    %cst_13 = arith.constant dense<0.000000e+00> : vector<16x128xf32>
    %17 = tpu.matmul %14, %16, %cst_13 {dimension_numbers = #tpu.dot_dimension_numbers<[1], [0], [0], [1], [0, 0, 1, 1], [], []>} : vector<16x128xf32>, vector<128x128xf32>, vector<16x128xf32> -> vector<16x128xf32>
    %cst_14 = arith.constant 0.00999999977 : f32
    %18 = vector.broadcast %cst_14 : f32 to vector<16x128xf32>
    %19 = arith.mulf %18, %17 : vector<16x128xf32>
    %20 = arith.maximumf %17, %19 : vector<16x128xf32>
    %c2 = arith.constant 2 : index
    %c0_15 = arith.constant 0 : index
    %c0_16 = arith.constant 0 : index
    %21 = vector.load %arg3[%c2, %c0_15, %c0_16] : memref<3x128x128xf32, #tpu.memory_space<vmem>>, vector<1x128x128xf32>
    %22 = vector.shape_cast %21 : vector<1x128x128xf32> to vector<128x128xf32>
    %cst_17 = arith.constant dense<0.000000e+00> : vector<16x128xf32>
    %23 = tpu.matmul %20, %22, %cst_17 {dimension_numbers = #tpu.dot_dimension_numbers<[1], [0], [0], [1], [0, 0, 1, 1], [], []>} : vector<16x128xf32>, vector<128x128xf32>, vector<16x128xf32> -> vector<16x128xf32>
    %24 = vector.extract_strided_slice %23 {offsets = [0, 0], sizes = [16, 8], strides = [1, 1]} : vector<16x128xf32> to vector<16x8xf32>
    %c0_18 = arith.constant 0 : index
    %c0_19 = arith.constant 0 : index
    %25 = vector.load %arg5[%c0_18, %c0_19] : memref<16x8xf32, #tpu.memory_space<vmem>>, vector<16x8xf32>
    tpu.vector_store %arg5[%c0_18, %c0_19], %24 {strides = array<i32>} : memref<16x8xf32, #tpu.memory_space<vmem>>, vector<16x8xf32>,
    return
  }
  func.func @transform_0(%arg0: i32) -> (i32, i32) {
    %c0_i32 = arith.constant 0 : i32
    %c0_i32_0 = arith.constant 0 : i32
    return %arg0, %c0_i32 : i32, i32
  }
  func.func @transform_1(%arg0: i32) -> (i32, i32) {
    %c0_i32 = arith.constant 0 : i32
    %c0_i32_0 = arith.constant 0 : i32
    %c0_i32_1 = arith.constant 0 : i32
    return %c0_i32, %c0_i32_0 : i32, i32
  }
  func.func @transform_2(%arg0: i32) -> (i32, i32, i32) {
    %c0_i32 = arith.constant 0 : i32
    %c0_i32_0 = arith.constant 0 : i32
    %c0_i32_1 = arith.constant 0 : i32
    %c0_i32_2 = arith.constant 0 : i32
    return %c0_i32, %c0_i32_0, %c0_i32_1 : i32, i32, i32
  }
  func.func @transform_3(%arg0: i32) -> (i32, i32) {
    %c0_i32 = arith.constant 0 : i32
    %c0_i32_0 = arith.constant 0 : i32
    %c0_i32_1 = arith.constant 0 : i32
    return %c0_i32, %c0_i32_0 : i32, i32
  }
  func.func @transform_4(%arg0: i32) -> (i32, i32) {
    %c0_i32 = arith.constant 0 : i32
    %c0_i32_0 = arith.constant 0 : i32
    return %arg0, %c0_i32 : i32, i32
  }
}

</mosaic_0001>

<bundles_post_ra>
// kernel: tpu_custom_call.1
= control target key start
LH: loop header
LB: loop body
LE: loop exit
PB: predicated region body
PF: predicated region fallthrough
CT: control target
= control target key end

     0   :  { %9 = vsyncpa [#allocation3], 0  ;;  %s945_s0 = inlined_call_operand.hbm [shape: f32[16,84], index: 0, kind: input, shape index: {}]   ;;  %s946_s1 = inlined_call_operand.hbm [shape: f32[84,128], index: 1, kind: input, shape index: {}]   ;;  %s947_s2 = inlined_call_operand.hbm [shape: f32[3,128,128], index: 2, kind: input, shape index: {}]   ;;  %s948_s3 = inlined_call_operand.vmem [shape: f32[1,128], index: 3, kind: input, shape index: {}]   ;;  %s949_s4 = inlined_call_operand.vmem [shape: f32[16,8], index: 4, kind: output, shape index: {}]  }
   0x1   :  { %10 = vsyncpa [#allocation5], 0  ;;  %s852_s15 = smov [#allocation4]   ;;  %s853_s17 = smov [#allocation2]  }
   0x2   :  { %s28_s16 = sshll.u32 %s852_s15, 4  ;;  %s16_s18 = sshll.u32 %s853_s17, 4  ;;  %s29_s16 = int_to_ptr.vmem [resolvable:$true] %s28_s16  ;;  %s882_s18 = int_to_ptr.vmem [resolvable:$true] %s16_s18 }
   0x3   :  { %s782_s21 = scalar_lea.hbm %s946_s1, 1408 }
   0x4   :  { %p783_p0 = scmp.ne.s32.totalorder %s946_s1, %s782_s21  ;;  %p786_p1 = scmp.lt.u32.totalorder %s782_s21, %s946_s1 }
   0x6   :  { %p788_p2 = pnand %p786_p1, %p783_p0 }
   0x8   :  { %791 = shalt.err (!%p788_p2)
}
   0x9   :  { %s792_s26 = scalar_lea.vmem %s29_s16, 1408  ;;  %p797_p4 = scmp.lt.s32.totalorder %s29_s16, %s29_s16 }
   0xa   :  { %p793_p3 = scmp.ne.s32.totalorder %s29_s16, %s792_s26  ;;  %p798_p5 = scmp.lt.s32.totalorder %s792_s26, %s792_s26 }
   0xc   :  { %p799_p6 = por %p798_p5, %p797_p4 }
   0xe   :  { %p800_p7 = pnand %p799_p6, %p793_p3 }
  0x10   :  { %803 = shalt.err (!%p800_p7)
}
  0x11   :  { %s854_s27 = smov 128   ;;  %s855_s28 = smov 8  }
  0x12   :  { %34 = dma.hbm_to_vmem [thread:$0]  %s946_s1, 1408, %s29_s16, [#allocation5], %s854_s27, %s854_s27, %s855_s28  }
  0x13   :  { %s804_s7 = scalar_lea.hbm %s945_s0, 256 }
  0x14   :  { %p805_p8 = scmp.ne.s32.totalorder %s945_s0, %s804_s7  ;;  %p808_p9 = scmp.lt.u32.totalorder %s804_s7, %s945_s0 }
  0x16   :  { %p810_p10 = pnand %p808_p9, %p805_p8 }
  0x18   :  { %813 = shalt.err (!%p810_p10)
}
  0x19   :  { %s814_s12 = scalar_lea.vmem %s882_s18, 256  ;;  %p819_p12 = scmp.lt.s32.totalorder %s882_s18, %s882_s18 }
  0x1a   :  { %p815_p11 = scmp.ne.s32.totalorder %s882_s18, %s814_s12  ;;  %p820_p13 = scmp.lt.s32.totalorder %s814_s12, %s814_s12 }
  0x1c   :  { %p821_p0 = por %p820_p13, %p819_p12 }
  0x1e   :  { %p822_p1 = pnand %p821_p0, %p815_p11 }
  0x20   :  { %825 = shalt.err (!%p822_p1)
}
  0x21   :  { %22 = dma.hbm_to_vmem [thread:$0]  %s945_s0, 256, %s882_s18, [#allocation3], %s854_s27, %s854_s27, %s855_s28  }
  0x22   :  { %s856_s14 = smov [#allocation6]   ;;  %s826_s19 = scalar_lea.hbm %s947_s2, 6144 }
  0x23   :  { %s40_s15 = sshll.u32 %s856_s14, 4  ;;  %p827_p2 = scmp.ne.s32.totalorder %s947_s2, %s826_s19  ;;  %s41_s15 = int_to_ptr.vmem [resolvable:$true] %s40_s15 }
  0x24   :  { %p830_p3 = scmp.lt.u32.totalorder %s826_s19, %s947_s2 }
  0x26   :  { %p832_p4 = pnand %p830_p3, %p827_p2 }
  0x28   :  { %835 = shalt.err (!%p832_p4)
}
  0x29   :  { %s836_s24 = scalar_lea.vmem %s41_s15, 6144  ;;  %p841_p6 = scmp.lt.s32.totalorder %s41_s15, %s41_s15 }
  0x2a   :  { %p837_p5 = scmp.ne.s32.totalorder %s41_s15, %s836_s24  ;;  %p842_p7 = scmp.lt.s32.totalorder %s836_s24, %s836_s24 }
  0x2c   :  { %p843_p8 = por %p842_p7, %p841_p6 }
  0x2e   :  { %p844_p9 = pnand %p843_p8, %p837_p5 }
  0x30   :  { %847 = shalt.err (!%p844_p9)
}
  0x31   :  { %46 = dma.hbm_to_vmem [thread:$0]  %s947_s2, 6144, %s41_s15, [#allocation5], %s854_s27, %s854_s27, %s855_s28  }
  0x32   :  { %848 = dma.done.wait [#allocation3], 256  }
  0x33   :  { %849 = vsyncadd [#allocation3], 4294967040 }
  0x34   :  { %850 = dma.done.wait [#allocation5], 7552  }
  0x35   :  { %851 = vsyncadd [#allocation5], 4294959744  ;;  %v60_v0 = vld [vmem:[#allocation4] sm:$0xff]  ;;  %v61_v1 = vld [vmem:[#allocation4 + $0x8] sm:$0xff]  ;;  %vm78_vm0 = vcmask 687104   ;;  %vm85_vm1 = vcmask 1043456  }
  0x36   :  { %v62_v2 = vld [vmem:[#allocation4 + $0x10] sm:$0xff]  ;;  %v661_v3 = vpack.c.bf16 %v61_v1, %v60_v0  ;;  %v63_v4 = vld [vmem:[#allocation4 + $0x18] sm:$0xff]  ;;  %v64_v6 = vld [vmem:[#allocation4 + $0x20] sm:$0xff]  ;;  %vm451_vm2 = vcmask 64512  }
  0x37   :  { %v665_v5 = vpack.c.bf16 %v63_v4, %v62_v2  ;;  %v65_v7 = vld [vmem:[#allocation4 + $0x28] sm:$0xff]  ;;  %v58_v8 = vld [vmem:[#allocation2] sm:$0xff]  ;;  %v168_v9 = vld [vmem:[#allocation6] sm:$0xff] }
  0x38   :  { %662 = vmatprep.subr.bf16.mxu0 %v661_v3  ;;  %553 = vmatprep.mubr.msk.f32.mxu0 %vm78_vm0, %v58_v8  ;;  %v169_v10 = vld [vmem:[#allocation6 + $0x8] sm:$0xff]  ;;  %v669_v11 = vpack.c.bf16 %v65_v7, %v64_v6  ;;  %v66_v12 = vld [vmem:[#allocation4 + $0x30] sm:$0xff]  ;;  %v170_v14 = vld [vmem:[#allocation6 + $0x10] sm:$0xff] }
  0x39   :  { %664 = vmatpush3.bf16.msra.mxu0 %v661_v3  ;;  %v681_v13 = vpack.c.bf16 %v169_v10, %v168_v9  ;;  %v171_v15 = vld [vmem:[#allocation6 + $0x18] sm:$0xff]  ;;  %v67_v16 = vld [vmem:[#allocation4 + $0x38] sm:$0xff]  ;;  %v173_v19 = vld [vmem:[#allocation6 + $0x28] sm:$0xff] }
  0x3a   :  { %666 = vmatprep.subr.bf16.mxu0 %v665_v5  ;;  %v685_v17 = vpack.c.bf16 %v171_v15, %v170_v14  ;;  %v172_v18 = vld [vmem:[#allocation6 + $0x20] sm:$0xff]  ;;  %v673_v20 = vpack.c.bf16 %v67_v16, %v66_v12  ;;  %v68_v21 = vld [vmem:[#allocation4 + $0x40] sm:$0xff]  ;;  %v69_v23 = vld [vmem:[#allocation4 + $0x48] sm:$0xff] }
  0x3b   :  { %682 = vmatprep.subr.bf16.mxu1 %v681_v13  ;;  %v689_v22 = vpack.c.bf16 %v173_v19, %v172_v18  ;;  %v174_v24 = vld [vmem:[#allocation6 + $0x30] sm:$0xff]  ;;  %v175_v25 = vld [vmem:[#allocation6 + $0x38] sm:$0xff]  ;;  %v677_v26 = vpack.c.bf16 %v69_v23, %v68_v21  ;;  %v176_v28 = vld [vmem:[#allocation6 + $0x40] sm:$0xff] }
  0x3c   :  { %684 = vmatpush3.bf16.msra.mxu1 %v681_v13  ;;  %v693_v27 = vpack.c.bf16 %v175_v25, %v174_v24  ;;  %v177_v29 = vld [vmem:[#allocation6 + $0x48] sm:$0xff]  ;;  %v70_v31 = vld [vmem:[#allocation4 + $0x50] sm:$0xf]  ;;  %v178_v32 = vld [vmem:[#allocation6 + $0x50] sm:$0xff] }
  0x3d   :  { %668 = vmatpush3.bf16.msra.mxu0 %v665_v5  ;;  %686 = vmatprep.subr.bf16.mxu1 %v685_v17  ;;  %v697_v30 = vpack.c.bf16 %v177_v29, %v176_v28  ;;  %v179_v33 = vld [vmem:[#allocation6 + $0x58] sm:$0xff]  ;;  %v59_v35 = vld [vmem:[#allocation2 + $0x8] sm:$0xff]  ;;  %v181_v37 = vld [vmem:[#allocation6 + $0x68] sm:$0xff] }
  0x3e   :  { %670 = vmatprep.subr.bf16.mxu0 %v669_v11  ;;  %v701_v34 = vpack.c.bf16 %v179_v33, %v178_v32  ;;  %v180_v36 = vld [vmem:[#allocation6 + $0x60] sm:$0xff]  ;;  %v182_v39 = vld [vmem:[#allocation6 + $0x70] sm:$0xff]  ;;  %v183_v40 = vld [vmem:[#allocation6 + $0x78] sm:$0xff] }
  0x3f   :  { %v705_v38 = vpack.c.bf16 %v181_v37, %v180_v36  ;;  %v709_v41 = vpack.c.bf16 %v183_v40, %v182_v39  ;;  %v264_v42 = vld [vmem:[#allocation6 + $0x80] sm:$0xff]  ;;  %v265_v43 = vld [vmem:[#allocation6 + $0x88] sm:$0xff]  ;;  %v266_v44 = vld [vmem:[#allocation6 + $0x90] sm:$0xff] }
  0x40   :  { %688 = vmatpush3.bf16.msra.mxu1 %v685_v17  ;;  %v713_v45 = vpack.c.bf16 %v265_v43, %v264_v42  ;;  %v267_v46 = vld [vmem:[#allocation6 + $0x98] sm:$0xff]  ;;  %v268_v48 = vld [vmem:[#allocation6 + $0xa0] sm:$0xff]  ;;  %v269_v49 = vld [vmem:[#allocation6 + $0xa8] sm:$0xff] }
  0x41   :  { %672 = vmatpush3.bf16.msra.mxu0 %v669_v11  ;;  %690 = vmatprep.subr.bf16.mxu1 %v689_v22  ;;  %v717_v47 = vpack.c.bf16 %v267_v46, %v266_v44  ;;  %v721_v50 = vpack.c.bf16 %v269_v49, %v268_v48  ;;  %v270_v51 = vld [vmem:[#allocation6 + $0xb0] sm:$0xff]  ;;  %v271_v52 = vld [vmem:[#allocation6 + $0xb8] sm:$0xff]  ;;  %v272_v54 = vld [vmem:[#allocation6 + $0xc0] sm:$0xff] }
  0x42   :  { %674 = vmatprep.subr.bf16.mxu0 %v673_v20  ;;  %v725_v53 = vpack.c.bf16 %v271_v52, %v270_v51  ;;  %v273_v55 = vld [vmem:[#allocation6 + $0xc8] sm:$0xff]  ;;  %v274_v57 = vld [vmem:[#allocation6 + $0xd0] sm:$0xff]  ;;  %v275_v58 = vld [vmem:[#allocation6 + $0xd8] sm:$0xff] }
  0x43   :  { %v729_v56 = vpack.c.bf16 %v273_v55, %v272_v54  ;;  %v733_v59 = vpack.c.bf16 %v275_v58, %v274_v57  ;;  %v276_v60 = vld [vmem:[#allocation6 + $0xe0] sm:$0xff]  ;;  %v277_v61 = vld [vmem:[#allocation6 + $0xe8] sm:$0xff]  ;;  %v278_v8 = vld [vmem:[#allocation6 + $0xf0] sm:$0xff] }
  0x44   :  { %692 = vmatpush3.bf16.msra.mxu1 %v689_v22  ;;  %v737_v62 = vpack.c.bf16 %v277_v61, %v276_v60  ;;  %v460_v63 = vld [vmem:[%s948_s3] ss:$0 sm:$0xff]  ;;  %v279_v9 = vld [vmem:[#allocation6 + $0xf8] sm:$0xff]  ;;  %v360_v11 = vld [vmem:[#allocation6 + $0x100] sm:$0xff] }
  0x45   :  { %676 = vmatpush3.bf16.msra.mxu0 %v673_v20  ;;  %694 = vmatprep.subr.bf16.mxu1 %v693_v27  ;;  %v741_v10 = vpack.c.bf16 %v279_v9, %v278_v8  ;;  %v361_v12 = vld [vmem:[#allocation6 + $0x108] sm:$0xff]  ;;  %v362_v13 = vld [vmem:[#allocation6 + $0x110] sm:$0xff]  ;;  %v363_v15 = vld [vmem:[#allocation6 + $0x118] sm:$0xff] }
  0x46   :  { %678 = vmatprep.subr.bf16.mxu0 %v677_v26  ;;  %v745_v14 = vpack.c.bf16 %v361_v12, %v360_v11  ;;  %v749_v16 = vpack.c.bf16 %v363_v15, %v362_v13  ;;  %v364_v17 = vld [vmem:[#allocation6 + $0x120] sm:$0xff]  ;;  %v365_v18 = vld [vmem:[#allocation6 + $0x128] sm:$0xff]  ;;  %v366_v20 = vld [vmem:[#allocation6 + $0x130] sm:$0xff] }
  0x47   :  { %v753_v19 = vpack.c.bf16 %v365_v18, %v364_v17  ;;  %v367_v21 = vld [vmem:[#allocation6 + $0x138] sm:$0xff]  ;;  %v368_v23 = vld [vmem:[#allocation6 + $0x140] sm:$0xff]  ;;  %v369_v24 = vld [vmem:[#allocation6 + $0x148] sm:$0xff] }
  0x48   :  { %696 = vmatpush3.bf16.msra.mxu1 %v693_v27  ;;  %v757_v22 = vpack.c.bf16 %v367_v21, %v366_v20  ;;  %v761_v25 = vpack.c.bf16 %v369_v24, %v368_v23  ;;  %v371_v27 = vld [vmem:[#allocation6 + $0x158] sm:$0xff]  ;;  %v372_v29 = vld [vmem:[#allocation6 + $0x160] sm:$0xff] }
  0x49   :  { %680 = vmatpush3.bf16.msra.mxu0 %v677_v26  ;;  %698 = vmatprep.subr.bf16.mxu1 %v697_v30  ;;  %v370_v26 = vld [vmem:[#allocation6 + $0x150] sm:$0xff]  ;;  %v375_v39 = vld [vmem:[#allocation6 + $0x178] sm:$0xff] }
  0x4a   :  { %551 = vmatprep.subr.msk.mxu0 %vm85_vm1, %v70_v31  ;;  %v765_v28 = vpack.c.bf16 %v371_v27, %v370_v26 }
  0x4c   :  { %700 = vmatpush3.bf16.msra.mxu1 %v697_v30  ;;  %v373_v30 = vld [vmem:[#allocation6 + $0x168] sm:$0xff] }
  0x4d   :  { %552 = vmatpush3.msk.msra.mxu0 %vm85_vm1, %v70_v31  ;;  %702 = vmatprep.subr.bf16.mxu1 %v701_v34  ;;  %v769_v31 = vpack.c.bf16 %v373_v30, %v372_v29 }
  0x4e   :  { %554 = vmatmul.mubr.msk.f32.vlgmr.msra.gmra.mrb[0].mxu0 %vm78_vm0, %v59_v35  ;;  %714 = vmatprep.subr.bf16.mxu0 %v713_v45 }
  0x4f   :  { %716 = vmatpush3.bf16.msra.mxu0 %v713_v45 }
  0x50   :  { %704 = vmatpush3.bf16.msra.mxu1 %v701_v34  ;;  %718 = vmatprep.subr.bf16.mxu0 %v717_v47 }
  0x51   :  { %706 = vmatprep.subr.bf16.mxu1 %v705_v38 }
  0x53   :  { %720 = vmatpush3.bf16.msra.mxu0 %v717_v47 }
  0x54   :  { %708 = vmatpush3.bf16.msra.mxu1 %v705_v38  ;;  %722 = vmatprep.subr.bf16.mxu0 %v721_v50  ;;  %v374_v38 = vld [vmem:[#allocation6 + $0x170] sm:$0xff] }
  0x55   :  { %710 = vmatprep.subr.bf16.mxu1 %v709_v41  ;;  %v773_v40 = vpack.c.bf16 %v375_v39, %v374_v38 }
  0x57   :  { %724 = vmatpush3.bf16.msra.mxu0 %v721_v50 }
  0x58   :  { %712 = vmatpush3.bf16.msra.mxu1 %v709_v41  ;;  %726 = vmatprep.subr.bf16.mxu0 %v725_v53 }
  0x59   :  { %746 = vmatprep.subr.bf16.mxu1 %v745_v14 }
  0x5b   :  { %728 = vmatpush3.bf16.msra.mxu0 %v725_v53 }
  0x5c   :  { %730 = vmatprep.subr.bf16.mxu0 %v729_v56 }
  0x5f   :  { %732 = vmatpush3.bf16.msra.mxu0 %v729_v56 }
  0x60   :  { %734 = vmatprep.subr.bf16.mxu0 %v733_v59 }
  0x63   :  { %736 = vmatpush3.bf16.msra.mxu0 %v733_v59 }
  0x64   :  { %738 = vmatprep.subr.bf16.mxu0 %v737_v62 }
  0x67   :  { %740 = vmatpush3.bf16.msra.mxu0 %v737_v62 }
  0x68   :  { %742 = vmatprep.subr.bf16.mxu0 %v741_v10 }
  0x6b   :  { %744 = vmatpush3.bf16.msra.mxu0 %v741_v10 }
 0x121   :  { %v555_v0 = vpop.f32.mrb[0].mxu0 }
 0x122   :  { %v161_v1 = vadd.f32 %v555_v0, %v460_v63  ;;  %v155_v2 = vpop.f32.mrb[1].mxu0 }
 0x123   :  { %v156_v3 = vadd.f32 %v460_v63, %v155_v2 }
 0x124   :  { %v165_v4 = vmul.f32 0.01, %v161_v1 }
 0x125   :  { %v164_v5 = vmul.f32 0.01, %v156_v3 }
 0x126   :  { %v167_v7 = vmax.f32 %v161_v1, %v165_v4 }
 0x127   :  { %v166_v6 = vmax.f32 %v156_v3, %v164_v5 }
 0x129   :  { %588 = vmatprep.mubr.f32.mxu1 %v166_v6 }
 0x12a   :  { %589 = vmatmul.mubr.f32.vlgmr.msra.gmra.mrb[0].mxu1 %v167_v7 }
 0x12b   :  { %748 = vmatpush3.bf16.msra.mxu1 %v745_v14 }
 0x12c   :  { %750 = vmatprep.subr.bf16.mxu1 %v749_v16 }
 0x12f   :  { %752 = vmatpush3.bf16.msra.mxu1 %v749_v16 }
 0x130   :  { %754 = vmatprep.subr.bf16.mxu1 %v753_v19 }
 0x133   :  { %756 = vmatpush3.bf16.msra.mxu1 %v753_v19 }
 0x134   :  { %758 = vmatprep.subr.bf16.mxu1 %v757_v22 }
 0x137   :  { %760 = vmatpush3.bf16.msra.mxu1 %v757_v22 }
 0x138   :  { %762 = vmatprep.subr.bf16.mxu1 %v761_v25 }
 0x13b   :  { %764 = vmatpush3.bf16.msra.mxu1 %v761_v25 }
 0x13c   :  { %766 = vmatprep.subr.bf16.mxu1 %v765_v28 }
 0x13f   :  { %768 = vmatpush3.bf16.msra.mxu1 %v765_v28 }
 0x140   :  { %770 = vmatprep.subr.bf16.mxu1 %v769_v31 }
 0x143   :  { %772 = vmatpush3.bf16.msra.mxu1 %v769_v31 }
 0x144   :  { %774 = vmatprep.subr.bf16.mxu1 %v773_v40 }
 0x147   :  { %776 = vmatpush3.bf16.msra.mxu1 %v773_v40 }
 0x1fd   :  { %v590_v32 = vpop.f32.mrb[0].mxu1 }
 0x1fe   :  { %v260_v33 = vmul.f32 0.01, %v590_v32  ;;  %v250_v34 = vpop.f32.mrb[1].mxu1 }
 0x1ff   :  { %v259_v35 = vmul.f32 0.01, %v250_v34 }
 0x200   :  { %v262_v37 = vmax.f32 %v590_v32, %v260_v33 }
 0x201   :  { %v261_v36 = vmax.f32 %v250_v34, %v259_v35 }
 0x203   :  { %623 = vmatprep.mubr.f32.mxu0 %v261_v36 }
 0x204   :  { %624 = vmatmul.mubr.f32.vlgmr.msra.gmra.mrb[2].mxu0 %v262_v37 }
 0x2d7   :  { %v625_v41 = vpop.f32.mrb[2].mxu0 }
 0x2d8   :  { %v356_v42 = vmul.f32 0.01, %v625_v41  ;;  %v346_v43 = vpop.f32.mrb[3].mxu0 }
 0x2d9   :  { %v355_v44 = vmul.f32 0.01, %v346_v43 }
 0x2da   :  { %v358_v46 = vmax.f32 %v625_v41, %v356_v42 }
 0x2db   :  { %v357_v45 = vmax.f32 %v346_v43, %v355_v44 }
 0x2dd   :  { %658 = vmatprep.mubr.f32.mxu1 %v357_v45 }
 0x2de   :  { %659 = vmatmul.mubr.f32.vlgmr.msra.gmra.mrb[2].mxu1 %v358_v46 }
 0x3b1   :  { %v660_v47 = vpop.f32.mrb[2].mxu1 }
 0x3b2   :  { %453 = vst.msk [vmem:[%s949_s4 + $0x8] sm:$0xff] %vm451_vm2, %v660_v47  ;;  %v442_v48 = vpop.f32.mrb[3].mxu1 }
 0x3b3   :  { %452 = vst.msk [vmem:[%s949_s4] sm:$0xff] %vm451_vm2, %v442_v48 }
 0x3b4   :  { %458 = vsyncpa [#allocation3], 1 }
 0x3b5   :  { %459 = vsyncpa [#allocation5], 1 }

</bundles_post_ra>
